<compile_context>
chip_gen: v5e
topology: v5e:2x2
jax: 0.10.0
libtpu: 0.0.40
codegen_flags: <defaults>
</compile_context>

<pallas_src>
import functools

import jax
import jax.numpy as jnp
from jax.experimental import pallas as pl
from jax.experimental.pallas import tpu as pltpu


def _layernorm_kernel(x_ref, g_ref, b_ref, o_ref, *, eps):
    # x_ref: (BN, C, TILE_HW)   g_ref/b_ref: (1, C, 1)   o_ref: (BN, C, TILE_HW)
    x = x_ref[...].astype(jnp.float32)                       # (BN, C, T)
    # Single pass over the tile: sums along C, derive mean / var.
    mean = jnp.mean(x, axis=1, keepdims=True)                # (BN, 1, T)
    mean_sq = jnp.mean(x * x, axis=1, keepdims=True)         # (BN, 1, T)
    var = jnp.maximum(mean_sq - mean * mean, 0.0)            # unbiased=False
    std = jnp.sqrt(var)
    inv = 1.0 / (std + eps)                                  # exact; kernel is mem-bound
    g = g_ref[...].astype(jnp.float32)                       # (1, C, 1)
    b = b_ref[...].astype(jnp.float32)                       # (1, C, 1)
    o_ref[...] = ((x - mean) * inv * g + b).astype(o_ref.dtype)


def _choose_block(hw, c, n, itemsize, target_bytes=4 << 20):
    """Pick (tile_hw, block_n): lane-dense HW tile (multiple of 128 or == HW)
    and an image-batching factor so each grid step moves ~target_bytes."""
    hw_pad128 = pl.cdiv(hw, 128) * 128
    row_bytes = max(c * itemsize, 1)
    t = max(128, (target_bytes // row_bytes) // 128 * 128)
    if t >= hw_pad128:
        tile_hw = hw            # single full block per image row (no masking)
    else:
        tile_hw = t             # multiple of 128; last block ragged -> Pallas masks
    block_bytes = max(c * tile_hw * itemsize, 1)
    block_n = max(1, min(n, int(target_bytes // block_bytes)))
    # Keep >= 2 grid steps when possible so both v7x TensorCores get work.
    if tile_hw >= hw and n >= 2:
        block_n = min(block_n, max(1, n // 2))
    return tile_hw, block_n


def layernorm_nchw(x, g, b, eps=1e-5, tile_hw=None, block_n=None):
    """x: (N, C, H, W); g, b: (1, C, 1, 1). Returns (N, C, H, W).

    Note: for bf16 inputs the sublane pack is 16, so C < 16 under-fills each
    vreg on the sublane axis; f32 accumulation is kept inside the kernel in
    all cases.
    """
    N, C, H, W = x.shape
    HW = H * W
    itemsize = jnp.dtype(x.dtype).itemsize

    # Free view: no transpose, no data movement. Channel axis -> sublanes,
    # spatial axis -> lanes.
    x3 = x.reshape(N, C, HW)
    g3 = g.reshape(1, C, 1)
    b3 = b.reshape(1, C, 1)

    auto_t, auto_bn = _choose_block(HW, C, N, itemsize)
    if tile_hw is None:
        tile_hw = auto_t
    if block_n is None:
        block_n = auto_bn

    grid = (pl.cdiv(N, block_n), pl.cdiv(HW, tile_hw))
    kernel = functools.partial(_layernorm_kernel, eps=eps)

    out3 = pl.pallas_call(
        kernel,
        out_shape=jax.ShapeDtypeStruct((N, C, HW), x.dtype),
        grid_spec=pltpu.PrefetchScalarGridSpec(
            num_scalar_prefetch=0,
            grid=grid,
            in_specs=[
                pl.BlockSpec((block_n, C, tile_hw), lambda n, j: (n, 0, j)),
                pl.BlockSpec((1, C, 1), lambda n, j: (0, 0, 0)),
                pl.BlockSpec((1, C, 1), lambda n, j: (0, 0, 0)),
            ],
            out_specs=pl.BlockSpec((block_n, C, tile_hw), lambda n, j: (n, 0, j)),
        ),
        compiler_params=pltpu.CompilerParams(
            dimension_semantics=("parallel", "parallel"),
            vmem_limit_bytes=48 * 1024 * 1024,
        ),
    )(x3, g3, b3)

    return out3.reshape(N, C, H, W)


def _reference(x, g, b, eps=1e-5):
    mean = jnp.mean(x, axis=1, keepdims=True)
    var = jnp.mean((x - mean) ** 2, axis=1, keepdims=True)
    std = jnp.sqrt(var)
    return (x - mean) / (std + eps) * g + b


if __name__ == "__main__":
    key = jax.random.PRNGKey(0)
    N, C, H, W = 2, 4, 16, 16
    x = jax.random.normal(key, (N, C, H, W), dtype=jnp.float32)

    # Deterministic parameter init matching nn.Parameter(torch.ones/zeros).
    g = jnp.ones((1, C, 1, 1), dtype=jnp.float32)
    b = jnp.zeros((1, C, 1, 1), dtype=jnp.float32)

    out = layernorm_nchw(x, g, b)
    out = jax.block_until_ready(out)

    ref = _reference(x, g, b)
    assert out.shape == (N, C, H, W)
    assert jnp.allclose(out, ref, atol=1e-4, rtol=1e-4), "mismatch vs reference"

    print("KERNEL_OK")
</pallas_src>

<mosaic_0001>
module attributes {stable_mosaic.version = 11 : i64} {
  func.func @_layernorm_kernel(%arg0: i32, %arg1: i32, %arg2: memref<1x4x256xf32, #tpu.memory_space<vmem>>, %arg3: memref<1x4x1xf32, #tpu.memory_space<vmem>>, %arg4: memref<1x4x1xf32, #tpu.memory_space<vmem>>, %arg5: memref<1x4x256xf32, #tpu.memory_space<vmem>>) attributes {dimension_semantics = [#tpu.dimension_semantics<parallel>, #tpu.dimension_semantics<parallel>], iteration_bounds = array<i64: 2, 1>, scalar_prefetch = 0 : i64, scratch_operands = 0 : i64, tpu.core_type = #tpu.core_type<tc>, window_params = [{transform_indices = @transform_0, window_bounds = array<i64: 1, 4, 256>}, {pipeline_mode = #tpu.pipeline_mode<synchronous>, transform_indices = @transform_1, window_bounds = array<i64: 1, 4, 1>}, {pipeline_mode = #tpu.pipeline_mode<synchronous>, transform_indices = @transform_2, window_bounds = array<i64: 1, 4, 1>}, {transform_indices = @transform_3, window_bounds = array<i64: 1, 4, 256>}]} {
    %c0 = arith.constant 0 : index
    %c0_0 = arith.constant 0 : index
    %c0_1 = arith.constant 0 : index
    %0 = vector.load %arg2[%c0, %c0_0, %c0_1] : memref<1x4x256xf32, #tpu.memory_space<vmem>>, vector<1x4x256xf32>
    %cst = arith.constant dense<0.000000e+00> : vector<1x256xf32>
    %1 = vector.multi_reduction <add>, %0, %cst [1] : vector<1x4x256xf32> to vector<1x256xf32>
    %2 = vector.shape_cast %1 : vector<1x256xf32> to vector<1x1x256xf32>
    %cst_2 = arith.constant 4.000000e+00 : f32
    %3 = vector.broadcast %cst_2 : f32 to vector<1x1x256xf32>
    %4 = arith.divf %2, %3 : vector<1x1x256xf32>
    %5 = arith.mulf %0, %0 : vector<1x4x256xf32>
    %cst_3 = arith.constant dense<0.000000e+00> : vector<1x256xf32>
    %6 = vector.multi_reduction <add>, %5, %cst_3 [1] : vector<1x4x256xf32> to vector<1x256xf32>
    %7 = vector.shape_cast %6 : vector<1x256xf32> to vector<1x1x256xf32>
    %cst_4 = arith.constant 4.000000e+00 : f32
    %8 = vector.broadcast %cst_4 : f32 to vector<1x1x256xf32>
    %9 = arith.divf %7, %8 : vector<1x1x256xf32>
    %10 = arith.mulf %4, %4 : vector<1x1x256xf32>
    %11 = arith.subf %9, %10 : vector<1x1x256xf32>
    %cst_5 = arith.constant 0.000000e+00 : f32
    %12 = vector.broadcast %cst_5 : f32 to vector<1x1x256xf32>
    %13 = arith.maximumf %11, %12 : vector<1x1x256xf32>
    %14 = math.sqrt %13 : vector<1x1x256xf32>
    %cst_6 = arith.constant 9.99999974E-6 : f32
    %15 = vector.broadcast %cst_6 : f32 to vector<1x1x256xf32>
    %16 = arith.addf %14, %15 : vector<1x1x256xf32>
    %cst_7 = arith.constant 1.000000e+00 : f32
    %17 = vector.broadcast %cst_7 : f32 to vector<1x1x256xf32>
    %18 = arith.divf %17, %16 : vector<1x1x256xf32>
    %c0_8 = arith.constant 0 : index
    %c0_9 = arith.constant 0 : index
    %c0_10 = arith.constant 0 : index
    %19 = vector.load %arg3[%c0_8, %c0_9, %c0_10] : memref<1x4x1xf32, #tpu.memory_space<vmem>>, vector<1x4x1xf32>
    %c0_11 = arith.constant 0 : index
    %c0_12 = arith.constant 0 : index
    %c0_13 = arith.constant 0 : index
    %20 = vector.load %arg4[%c0_11, %c0_12, %c0_13] : memref<1x4x1xf32, #tpu.memory_space<vmem>>, vector<1x4x1xf32>
    %21 = vector.broadcast %4 : vector<1x1x256xf32> to vector<1x4x256xf32>
    %22 = arith.subf %0, %21 : vector<1x4x256xf32>
    %23 = vector.broadcast %18 : vector<1x1x256xf32> to vector<1x4x256xf32>
    %24 = arith.mulf %22, %23 : vector<1x4x256xf32>
    %25 = vector.broadcast %19 : vector<1x4x1xf32> to vector<1x4x256xf32>
    %26 = arith.mulf %24, %25 : vector<1x4x256xf32>
    %27 = vector.broadcast %20 : vector<1x4x1xf32> to vector<1x4x256xf32>
    %28 = arith.addf %26, %27 : vector<1x4x256xf32>
    %c0_14 = arith.constant 0 : index
    %c0_15 = arith.constant 0 : index
    %c0_16 = arith.constant 0 : index
    %29 = vector.load %arg5[%c0_14, %c0_15, %c0_16] : memref<1x4x256xf32, #tpu.memory_space<vmem>>, vector<1x4x256xf32>
    tpu.vector_store %arg5[%c0_14, %c0_15, %c0_16], %28 {strides = array<i32>} : memref<1x4x256xf32, #tpu.memory_space<vmem>>, vector<1x4x256xf32>,
    return
  }
  func.func @transform_0(%arg0: i32, %arg1: i32) -> (i32, i32, i32) {
    %c0_i32 = arith.constant 0 : i32
    %c0_i32_0 = arith.constant 0 : i32
    return %arg0, %c0_i32, %arg1 : i32, i32, i32
  }
  func.func @transform_1(%arg0: i32, %arg1: i32) -> (i32, i32, i32) {
    %c0_i32 = arith.constant 0 : i32
    %c0_i32_0 = arith.constant 0 : i32
    %c0_i32_1 = arith.constant 0 : i32
    %c0_i32_2 = arith.constant 0 : i32
    return %c0_i32, %c0_i32_0, %c0_i32_1 : i32, i32, i32
  }
  func.func @transform_2(%arg0: i32, %arg1: i32) -> (i32, i32, i32) {
    %c0_i32 = arith.constant 0 : i32
    %c0_i32_0 = arith.constant 0 : i32
    %c0_i32_1 = arith.constant 0 : i32
    %c0_i32_2 = arith.constant 0 : i32
    return %c0_i32, %c0_i32_0, %c0_i32_1 : i32, i32, i32
  }
  func.func @transform_3(%arg0: i32, %arg1: i32) -> (i32, i32, i32) {
    %c0_i32 = arith.constant 0 : i32
    %c0_i32_0 = arith.constant 0 : i32
    return %arg0, %c0_i32, %arg1 : i32, i32, i32
  }
}

</mosaic_0001>

<bundles_post_ra>
// kernel: tpu_custom_call.1
= control target key start
LH: loop header
LB: loop body
LE: loop exit
PB: predicated region body
PF: predicated region fallthrough
CT: control target
= control target key end

     0   :  { %8 = vsyncpa [#allocation3], 0  ;;  %s845_s0 = inlined_call_operand.hbm [shape: f32[2,4,256], index: 0, kind: input, shape index: {}]   ;;  %s846_s1 = inlined_call_operand.vmem [shape: f32[1,4,1], index: 1, kind: input, shape index: {}]   ;;  %s847_s2 = inlined_call_operand.vmem [shape: f32[1,4,1], index: 2, kind: input, shape index: {}]   ;;  %s848_s3 = inlined_call_operand.hbm [shape: f32[2,4,256], index: 3, kind: output, shape index: {}]  }
   0x1   :  { %10 = vsyncpa [#allocation3 + $0x1], 0 }
   0x2   :  { %11 = vsyncpa [#allocation4], 0 }
   0x3   :  { %13 = vsyncpa [#allocation4 + $0x1], 0  ;;  %s693_s12 = smov 0   ;;  %s695_s13 = smov 0  }
   0x4   :  { %s697_s14 = smov 0   ;;  %s699_s15 = smov 0  }
   0x5   :  { %s701_s16 = smov 0   ;;  %s703_s17 = smov 0  }
   0x6 LB: > { %s463_s18 = sadd.s32 4294967295, %s668_s17   ;;  %s464_s19 = sadd.s32 4294967294, %s668_s17   ;;  %s668_s17 = sphi %s703_s17, %s19_s17   ;;  %s664_s16 = sphi %s701_s16, %s857_s16   ;;  %s660_s15 = sphi %s699_s15, %s856_s15   ;;  %s656_s14 = sphi %s697_s14, %s855_s14   ;;  %s652_s13 = sphi %s695_s13, %s854_s13   ;;  %s648_s12 = sphi %s693_s12, %s853_s12  }
   0x7   : > { %s31_s20 = sadd.s32 1, %s664_s16  ;;  %s40_s21 = sadd.s32 1, %s656_s14 }
   0x8   : > { %p33_p0 = scmp.ge.s32.totalorder %s31_s20, 2  ;;  %p47_p1 = scmp.ne.s32.totalorder %s656_s14, %s652_s13 }
   0x9   : > { %p48_p2 = scmp.eq.s32.totalorder %s668_s17, 0  ;;  %p53_p3 = scmp.ne.s32.totalorder %s652_s13, %s648_s12 }
   0xa   : > { %s859_s20 = smov (%p33_p0, %s31_s20), 0  ;;  %p54_p5 = scmp.eq.s32.totalorder %s463_s18, 0 }
   0xb   : > { %p734_p4 = por %p48_p2, %p47_p1  ;;  %s35_s23 = ssub.s32 %s664_s16, %s859_s20 }
   0xc   : > { %p121_p6 = scmp.eq.s32.totalorder %s463_s18, 1  ;;  %p38_p7 = scmp.eq.s32.totalorder %s35_s23, 0 }
   0xd   : > { %p740_p8 = por %p54_p5, %p53_p3  ;;  %p127_p10 = scmp.eq.s32.totalorder %s464_s19, 1 }
   0xe   : > { %p744_p9 = por %p121_p6, %p47_p1  ;;  %p466_p12 = scmp.ge.s32.totalorder %s668_s17, 2 }
   0xf   : > { %s749_s26 = scalar_select %p38_p7, %s656_s14, %s40_s21  }
  0x10   : > { %p751_p11 = por %p127_p10, %p53_p3  ;;  %p492_p13 = scmp.lt.s32.totalorder %s668_s17, 2 }
  0x11   : > { %s153_s28 = sand.u32 1, %s656_s14   ;;  %s478_s30 = sshll.u32 %s664_s16, 3 }
  0x12   : > { %s467_s29 = sshll.u32 %s153_s28, 3  ;;  %s164_s6 = scalar_lea.hbm %s845_s0, %s478_s30 }
  0x13   : > { %s157_s7 = scalar_lea.vmem [#allocation2], %s467_s29  ;;  %s166_s9 = sshll.u32 %s164_s6, 4  ;;  %s167_s9 = int_to_ptr.hbm [resolvable:$true] %s166_s9 }
  0x14   : > { %s168_s8 = sshll.u32 %s157_s7, 4  ;;  %p485_p0 = pnand %p492_p13, %p734_p4  ;;  %s169_s8 = int_to_ptr.vmem [resolvable:$true] %s168_s8 }
  0x15   : > { %p470_p1 = scmp.ge.s32.totalorder %s668_s17, 1  ;;  %p173_p2 = scmp.lt.s32.totalorder %s668_s17, 3 }
  0x16   : > { %s154_s10 = scalar_lea.sflag [#allocation3], %s153_s28 }
  0x17   : > { %487 = dma.hbm_to_vmem [thread:$0]  (!%p485_p0), %s167_s9, 128, %s169_s8, %s154_s10  }
  0x18   : > { %p174_p3 = pnand %p470_p1, %p173_p2 }
  0x19   : > { %s767_s11 = sand.u32 (!%p174_p3), 1, %s652_s13  }
  0x1a   : > { %177 = sbr.rel (%p174_p3) target bundleno = 164 (0xa4), region = 32  ;;  %s471_s18 = sshll.u32 (!%p174_p3), %s767_s11, 3 }
  0x1b   : > { %s180_s19 = scalar_lea.sflag (!%p174_p3), [#allocation3], %s767_s11  ;;  %s183_s21 = scalar_lea.vmem (!%p174_p3), [#allocation2], %s471_s18 }
  0x1f   : > { %639 = dma.done.wait (%p740_p8), %s180_s19, 128  }
  0x20   : > { %641 = vsyncadd (%p740_p8), %s180_s19, 4294967168  ;;  %v670_v0 = vmov 0   ;;  %v325_v1 = vld [vmem:[%s846_s1] sm:$0xf]  ;;  %v671_v2 = vmov 4.0   ;;  %v780_v3 = vld [vmem:[%s183_s21] sm:$0xff] }
  0x21   : > { %545 = vset.pattern.permute.xlu0 %v670_v0  ;;  %546 = vrcp.f32 %v671_v2  ;;  %v326_v4 = vld [vmem:[%s847_s2] sm:$0xf]  ;;  %211 = vst [vmem:[#allocation1] ss:$2 sm:$0xff] %v780_v3  ;;  %v240_v6 = vmul.f32 %v780_v3, %v780_v3  ;;  %vm216_vm0 = vcmask 1043456   ;;  %s479_s24 = sshll.u32 %s660_s15, 3 }
  0x22   : > { %341 = vperm.xlu0 %545, %v325_v1   ;;  %s374_s5 = scalar_lea.hbm %s848_s3, %s479_s24  ;;  %s206_s6 = scalar_lea.vmem [#allocation5], %s471_s18 }
  0x23   : > { %s376_s7 = sshll.u32 %s206_s6, 4  ;;  %s378_s8 = sshll.u32 %s374_s5, 4  ;;  %s377_s7 = int_to_ptr.vmem [resolvable:$true] %s376_s7  ;;  %s379_s8 = int_to_ptr.hbm [resolvable:$true] %s378_s8 }
  0x24   : > { %s361_s9 = scalar_lea.sflag [#allocation4], %s767_s11  ;;  %s600_s15 = sshra.s32 %s379_s8, 4  ;;  %s601_s15 = int_to_ptr.hbm [resolvable:$true] %s600_s15 }
  0x25   : > { %s602_s10 = scalar_lea.hbm %s601_s15, 8  ;;  %s606_s18 = scalar_lea.hbm %s848_s3, 16 }
  0x26   : > { %p603_p4 = scmp.ne.s32.totalorder %s601_s15, %s602_s10  ;;  %p607_p7 = scmp.lt.s32.totalorder %s601_s15, %s848_s3 }
  0x27   : > { %v547_v5 = vpop.eup %546  ;;  %p608_p8 = scmp.lt.s32.totalorder %s606_s18, %s602_s10 }
  0x28   : > { %v212_v7 = vld.sshfl [vmem:[#allocation1] sm:$0xff pattern:$0x75316420]  ;;  %v213_v8 = vld.sshfl [vmem:[#allocation1 + $0x8] sm:$0xff pattern:$0x75316420]  ;;  %vm236_vm1 = vweird.f32 %v547_v5  ;;  %p604_p5 = pnand %p603_p4, %p744_p9 }
  0x29   : > { %v232_v9 = vmul.f32 4.0, %v547_v5  ;;  %242 = vst [vmem:[#allocation1] ss:$2 sm:$0xff] %v240_v6  ;;  %v224_v11 = vsel %vm216_vm0, %v213_v8, 0.0  ;;  %v217_v15 = vsel %vm216_vm0, %v212_v7, 0.0  ;;  %p609_p10 = por %p608_p8, %p607_p7 }
  0x2a   : > { %351 = vperm.xlu0 %545, %v326_v4   ;;  %v225_v12 = vrot.slane %v224_v11, 4  ;;  %v218_v17 = vrot.slane %v217_v15, 4  ;;  %p605_p6 = pneg %p604_p5 }
  0x2b   : > { %v233_v10 = vsub.f32 1.0, %v232_v9 }
  0x2c   : > { %v226_v18 = vadd.f32 %v225_v12, %v224_v11  ;;  %v219_v22 = vadd.f32 %v218_v17, %v217_v15  ;;  %p610_p13 = pnand %p609_p10, %p605_p6 }
  0x2d   : > { %v234_v14 = vmul.f32 %v547_v5, %v233_v10 }
  0x2e   : > { %v227_v23 = vrot.slane %v226_v18, 2  ;;  %v220_v27 = vrot.slane %v219_v22, 2 }
  0x2f   : > { %v235_v26 = vadd.f32 %v547_v5, %v234_v14 }
  0x30   : > { %v244_v13 = vld.sshfl [vmem:[#allocation1 + $0x8] sm:$0xff pattern:$0x75316420]  ;;  %v243_v19 = vld.sshfl [vmem:[#allocation1] sm:$0xff pattern:$0x75316420]  ;;  %v228_v28 = vadd.f32 %v227_v23, %v226_v18  ;;  %v221_v31 = vadd.f32 %v220_v27, %v219_v22 }
  0x31   : > { %v254_v16 = vsel %vm216_vm0, %v244_v13, 0.0  ;;  %v247_v21 = vsel %vm216_vm0, %v243_v19, 0.0  ;;  %v237_v35 = vsel %vm236_vm1, %v547_v5, %v235_v26 }
  0x32   : > { %v255_v20 = vrot.slane %v254_v16, 4  ;;  %v248_v24 = vrot.slane %v247_v21, 4  ;;  %v229_v32 = vrot.slane %v228_v28, 1  ;;  %v222_v36 = vrot.slane %v221_v31, 1 }
  0x34   : > { %v256_v25 = vadd.f32 %v255_v20, %v254_v16  ;;  %v249_v29 = vadd.f32 %v248_v24, %v247_v21  ;;  %v230_v37 = vadd.f32 %v229_v32, %v228_v28  ;;  %v223_v40 = vadd.f32 %v222_v36, %v221_v31 }
  0x36   : > { %v257_v30 = vrot.slane %v256_v25, 2  ;;  %v250_v33 = vrot.slane %v249_v29, 2  ;;  %v792_v41 = vmul.f32 %v237_v35, %v230_v37  ;;  %v794_v44 = vmul.f32 %v237_v35, %v223_v40 }
  0x38   : > { %v258_v34 = vadd.f32 %v257_v30, %v256_v25  ;;  %v251_v38 = vadd.f32 %v250_v33, %v249_v29  ;;  %v264_v47 = vmul.f32 %v792_v41, %v792_v41  ;;  %v263_v49 = vmul.f32 %v794_v44, %v794_v44 }
  0x39   : > { %v329_v29 = vrot.slane %v792_v41, 4  ;;  %v672_v33 = vmov 839922192  }
  0x3a   : > { %v259_v39 = vrot.slane %v258_v34, 1  ;;  %v252_v42 = vrot.slane %v251_v38, 1 }
  0x3c   : > { %v260_v43 = vadd.f32 %v259_v39, %v258_v34  ;;  %v253_v45 = vadd.f32 %v252_v42, %v251_v38  ;;  %v344_v34 = vunpack.c.l.s4 %v672_v33 }
  0x3e   : > { %v262_v46 = vmul.f32 %v260_v43, %v237_v35  ;;  %v261_v48 = vmul.f32 %v253_v45, %v237_v35  ;;  %v330_v35 = vsel %vm216_vm0, %v794_v44, %v329_v29  ;;  %v345_v39 = vunpack.c.0.s8 %v344_v34 }
  0x3f   : > { %v332_v40 = vsub.f32 %v780_v3, %v330_v35 }
  0x40   : > { %v266_v50 = vsub.f32 %v262_v46, %v264_v47  ;;  %v265_v51 = vsub.f32 %v261_v48, %v263_v49 }
  0x42   : > { %v268_v52 = vmax.f32 %v266_v50, 0.0  ;;  %v267_v53 = vmax.f32 %v265_v51, 0.0 }
  0x44   : > { %548 = vrsqrt.f32 %v268_v52  ;;  %vm288_vm2 = vcmp.eq.f32.partialorder %v268_v52, inf  ;;  %v291_v4 = vand.u32 2147483648, %v268_v52  ;;  %vm290_vm3 = vcmp.eq.f32.partialorder %v268_v52, 0.0 }
  0x45   : > { %550 = vrsqrt.f32 %v267_v53  ;;  %vm276_vm4 = vcmp.eq.f32.partialorder %v267_v53, inf  ;;  %v279_v7 = vand.u32 2147483648, %v267_v53  ;;  %vm278_vm5 = vcmp.eq.f32.partialorder %v267_v53, 0.0 }
  0x4a   : > { %v549_v54 = vpop.eup %548 }
  0x4b   : > { %v282_v55 = vmul.f32 %v549_v54, %v268_v52  ;;  %v551_v56 = vpop.eup %550 }
  0x4c   : > { %v270_v57 = vmul.f32 %v551_v56, %v267_v53 }
  0x4d   : > { %v283_v58 = vmul.f32 %v549_v54, %v282_v55 }
  0x4e   : > { %v271_v59 = vmul.f32 %v551_v56, %v270_v57 }
  0x4f   : > { %v284_v60 = vmul.f32 0.5, %v283_v58 }
  0x50   : > { %v272_v61 = vmul.f32 0.5, %v271_v59 }
  0x51   : > { %v285_v62 = vsub.f32 1.5, %v284_v60 }
  0x52   : > { %v273_v63 = vsub.f32 1.5, %v272_v61 }
  0x53   : > { %v286_v0 = vmul.f32 %v549_v54, %v285_v62 }
  0x54   : > { %v274_v1 = vmul.f32 %v551_v56, %v273_v63 }
  0x55   : > { %v287_v2 = vmul.f32 %v286_v0, %v268_v52 }
  0x56   : > { %v275_v5 = vmul.f32 %v274_v1, %v267_v53 }
  0x57   : > { %v289_v6 = vsel %vm288_vm2, %v268_v52, %v287_v2 }
  0x58   : > { %v292_v8 = vsel %vm290_vm3, %v291_v4, %v289_v6  ;;  %v277_v9 = vsel %vm276_vm4, %v267_v53, %v275_v5 }
  0x59   : > { %v294_v10 = vadd.f32 1e-05, %v292_v8  ;;  %v280_v11 = vsel %vm278_vm5, %v279_v7, %v277_v9 }
  0x5a   : > { %v293_v12 = vadd.f32 1e-05, %v280_v11 }
  0x5b   : > { %552 = vrcp.f32 %v294_v10  ;;  %vm315_vm6 = vweird.f32 %v294_v10  ;;  %v321_v20 = vand.u32 2147483648, %v294_v10  ;;  %v319_v23 = vand.u32 2147483647, %v294_v10 }
  0x5c   : > { %554 = vrcp.f32 %v293_v12  ;;  %vm300_vm9 = vweird.f32 %v293_v12  ;;  %v306_v24 = vand.u32 2147483648, %v293_v12  ;;  %v304_v27 = vand.u32 2147483647, %v293_v12 }
  0x5d   : > { %v322_v25 = vor.u32 1.1754944e-38, %v321_v20  ;;  %vm320_vm11 = vcmp.eq.f32.partialorder %v319_v23, 8.507059e+37 }
  0x5e   : > { %v307_v30 = vor.u32 1.1754944e-38, %v306_v24  ;;  %vm305_vm13 = vcmp.eq.f32.partialorder %v304_v27, 8.507059e+37 }
  0x61   : > { %v553_v13 = vpop.eup %552 }
  0x62   : > { %v311_v14 = vmul.f32 %v553_v13, %v294_v10  ;;  %v555_v15 = vpop.eup %554  ;;  %vm316_vm7 = vweird.f32 %v553_v13 }
  0x63   : > { %v296_v16 = vmul.f32 %v555_v15, %v293_v12  ;;  %vm317_vm8 = vmor %vm315_vm6, %vm316_vm7  ;;  %vm301_vm10 = vweird.f32 %v555_v15 }
  0x64   : > { %v312_v17 = vsub.f32 1.0, %v311_v14  ;;  %vm302_vm12 = vmor %vm300_vm9, %vm301_vm10 }
  0x65   : > { %v297_v18 = vsub.f32 1.0, %v296_v16 }
  0x66   : > { %v313_v19 = vmul.f32 %v553_v13, %v312_v17 }
  0x67   : > { %v298_v21 = vmul.f32 %v555_v15, %v297_v18 }
  0x68   : > { %v314_v22 = vadd.f32 %v553_v13, %v313_v19 }
  0x69   : > { %v299_v26 = vadd.f32 %v555_v15, %v298_v21 }
  0x6a   : > { %v318_v28 = vsel %vm317_vm8, %v553_v13, %v314_v22 }
  0x6b   : > { %v323_v31 = vsel %vm320_vm11, %v322_v25, %v318_v28  ;;  %v303_v32 = vsel %vm302_vm12, %v555_v15, %v299_v26 }
  0x6c   : > { %v335_v36 = vrot.slane %v323_v31, 4  ;;  %v308_v37 = vsel %vm305_vm13, %v307_v30, %v303_v32 }
  0x6e   : > { %v336_v42 = vsel %vm216_vm0, %v308_v37, %v335_v36 }
  0x6f   : > { %v338_v41 = vmul.f32 %v336_v42, %v332_v40 }
  0x94   : > { %v342_v38 = vpop.permute.xlu0 %341 }
  0x95   : > { %v346_v43 = vperm.slane %v342_v38, %v345_v39 }
  0x97   : > { %v348_v44 = vmul.f32 %v346_v43, %v338_v41 }
  0x9c   : > { %v352_v45 = vpop.permute.xlu0 %351 }
  0x9d   : > { %v356_v46 = vperm.slane %v352_v45, %v345_v39 }
  0x9f   : > { %v358_v47 = vadd.f32 %v356_v46, %v348_v44 }
  0xa1   : > { %359 = vst [vmem:[%s206_s6] sm:$0xff] %v358_v47 }
  0xa2   : > { %613 = shalt.err (!%p610_p13)
}
  0xa3   : > { %482 = dma.vmem_to_hbm [thread:$0]  (%p744_p9), %s377_s7, 128, %s379_s8, %s361_s9  }
  0xa4 PF: > { %s390_s11 = sand.u32 1, %s648_s12   ;;  %p489_p0 = pnand %p466_p12, %p751_p11 }
  0xa5   : > { %s391_s28 = scalar_lea.sflag [#allocation4], %s390_s11 }
  0xa6   : > { %p490_p1 = pneg %p489_p0 }
  0xa8   : > { %643 = dma.done.wait (%p490_p1), %s391_s28, 128  }
  0xa9   : > { %645 = vsyncadd (%p490_p1), %s391_s28, 4294967168  ;;  %s19_s17 = sadd.s32 1, %s668_s17   ;;  %s853_s12 = smov %s652_s13 }
  0xaa   : > { %p16_p2 = scmp.ge.s32.totalorder %s19_s17, 4   ;;  %s854_s13 = smov %s656_s14 }
  0xab   : > { %s855_s14 = smov %s749_s26  ;;  %s856_s15 = smov %s664_s16 }
  0xac   : > { %s857_s16 = smov %s859_s20  ;;  %18 = sbr.rel (!%p16_p2) target bundleno = 6 (0x6), region = 77 }
  0xb1   :  { %397 = vsyncpa [#allocation3], 1 }
  0xb2   :  { %399 = vsyncpa [#allocation3 + $0x1], 1 }
  0xb3   :  { %400 = vsyncpa [#allocation4], 1 }
  0xb4   :  { %402 = vsyncpa [#allocation4 + $0x1], 1 }

</bundles_post_ra>
